<compile_context>
chip_gen: v7x
topology: tpu7x:2x2x1
jax: 0.10.0
libtpu: 0.0.40
codegen_flags: <defaults>
</compile_context>

<pallas_src>
import jax
import jax.numpy as jnp
from jax.experimental import pallas as pl
from jax.experimental.pallas import tpu as pltpu


def _round_up(x, m):
    return ((x + m - 1) // m) * m


def _maybe_cast(a, dtype):
    return a if a.dtype == jnp.dtype(dtype) else a.astype(dtype)


def _pick_tk(d_sae, tk_max):
    """Largest chunk <= tk_max that is a multiple of 128 and divides d_sae
    exactly (so weights never need per-call padding).  Falls back to a padded
    layout only when d_sae itself is not 128-aligned."""
    if d_sae % 128 == 0:
        start = min(tk_max, d_sae)
        start -= start % 128
        for c in range(start, 0, -128):
            if d_sae % c == 0:
                return c
    return min(tk_max, _round_up(d_sae, 128))


def _sae_kernel(x_ref, w_enc_ref, b_enc_ref, w_dec_ref, b_dec_ref,
                dec_ref, enc_ref):
    j = pl.program_id(1)

    # encode chunk: acts_j = relu(x @ W_enc[:, j] + b_enc_eff[j])  (f32 acc)
    pre = jnp.dot(x_ref[...], w_enc_ref[...],
                  preferred_element_type=jnp.float32) + b_enc_ref[...]
    acts = jnp.maximum(pre, 0.0)
    enc_ref[...] = acts.astype(enc_ref.dtype)

    # decoded block is resident across j (index_map (i, 0)): use it directly
    # as the f32 accumulator, seeded with b_dec at the first chunk.
    @pl.when(j == 0)
    def _():
        dec_ref[...] = jnp.broadcast_to(b_dec_ref[...],
                                        dec_ref.shape).astype(dec_ref.dtype)

    dec_ref[...] += jnp.dot(acts.astype(w_dec_ref.dtype), w_dec_ref[...],
                            preferred_element_type=jnp.float32)


def sae_forward(x, w_enc, b_enc, w_dec, b_dec, *,
                tm=512, tk=512,
                compute_dtype=jnp.bfloat16,
                enc_dtype=jnp.float32,
                vmem_limit_bytes=None):
    """CustomSAE forward.  x: (..., d_in).  Returns (decoded, encoded).

    compute_dtype: bf16 (default) feeds the MXU at native rate with f32
        accumulation (~1e-2 rel. divergence vs the f32 reference); pass
        jnp.float32 when bit-closeness matters.  For production, pass weights
        already in bf16 to avoid a per-call cast in HBM.
    enc_dtype: dtype of the encoded output (the largest HBM write); bf16
        halves its store bandwidth.  decoded is always f32 (it doubles as the
        in-VMEM accumulator).
    tm / tk: batch row tile and d_sae chunk (multiples of 128 recommended).
    """
    *lead, d_in = x.shape
    d_sae = w_enc.shape[1]
    x2d = x.reshape(-1, d_in)
    n = x2d.shape[0]

    # Fold b_dec into the encoder bias (mathematically exact; changes rounding
    # order slightly vs the PyTorch reference):
    #   (x - b_dec) @ W_enc + b_enc == x @ W_enc + (b_enc - b_dec @ W_enc)
    b_enc_eff = (b_enc.astype(jnp.float32)
                 - jnp.dot(b_dec.astype(jnp.float32),
                           w_enc.astype(jnp.float32)))

    # ---- tile sizing ------------------------------------------------------
    itemsize = jnp.dtype(compute_dtype).itemsize
    row_align = 8 * (4 // itemsize)          # 8 for f32, 16 for bf16
    n_rows = _round_up(max(n, 1), row_align)
    tm_eff = min(tm, n_rows)
    # Keep >= 2 batch tiles when the batch is big enough, so the "parallel"
    # axis can be split across both TensorCores on v7x.
    if tm_eff >= n_rows and n >= 512:
        tm_eff = min(tm, _round_up((n + 1) // 2, 256))
    tk_eff = _pick_tk(d_sae, tk)

    n_pad = _round_up(n, tm_eff)
    d_sae_pad = _round_up(d_sae, tk_eff)

    xc = _maybe_cast(x2d, compute_dtype)
    w_enc_c = _maybe_cast(w_enc, compute_dtype)
    w_dec_c = _maybe_cast(w_dec, compute_dtype)

    if n_pad != n:
        xc = jnp.pad(xc, ((0, n_pad - n), (0, 0)))
    if d_sae_pad != d_sae:
        # Only reached when d_sae is not 128-aligned.  Padded features see
        # pre = 0 -> relu = 0 -> contribute nothing to the decode.
        w_enc_c = jnp.pad(w_enc_c, ((0, 0), (0, d_sae_pad - d_sae)))
        w_dec_c = jnp.pad(w_dec_c, ((0, d_sae_pad - d_sae), (0, 0)))
        b_enc_eff = jnp.pad(b_enc_eff, (0, d_sae_pad - d_sae))

    b_enc2 = b_enc_eff.reshape(1, d_sae_pad)
    b_dec2 = b_dec.astype(jnp.float32).reshape(1, d_in)

    if vmem_limit_bytes is None:
        try:
            cap = pltpu.get_tpu_info().vmem_capacity_bytes
            vmem_limit_bytes = int(cap * 0.85)   # headroom for compiler scratch
        except Exception:
            vmem_limit_bytes = 48 * 1024 * 1024  # safe on every generation

    grid = (n_pad // tm_eff, d_sae_pad // tk_eff)

    decoded, encoded = pl.pallas_call(
        _sae_kernel,
        out_shape=(
            jax.ShapeDtypeStruct((n_pad, d_in), jnp.float32),     # decoded / acc
            jax.ShapeDtypeStruct((n_pad, d_sae_pad), enc_dtype),  # encoded
        ),
        grid_spec=pltpu.PrefetchScalarGridSpec(
            num_scalar_prefetch=0,
            grid=grid,
            in_specs=[
                pl.BlockSpec((tm_eff, d_in), lambda i, j: (i, 0)),   # x rows
                pl.BlockSpec((d_in, tk_eff), lambda i, j: (0, j)),   # W_enc[:, j]
                pl.BlockSpec((1, tk_eff), lambda i, j: (0, j)),      # b_enc_eff[j]
                pl.BlockSpec((tk_eff, d_in), lambda i, j: (j, 0)),   # W_dec[j, :]
                pl.BlockSpec((1, d_in), lambda i, j: (0, 0)),        # b_dec
            ],
            out_specs=[
                pl.BlockSpec((tm_eff, d_in), lambda i, j: (i, 0)),   # decoded (resident over j)
                pl.BlockSpec((tm_eff, tk_eff), lambda i, j: (i, j)), # encoded chunk
            ],
        ),
        compiler_params=pltpu.CompilerParams(
            dimension_semantics=("parallel", "arbitrary"),
            vmem_limit_bytes=vmem_limit_bytes),
    )(xc, w_enc_c, b_enc2, w_dec_c, b_dec2)

    if n_pad != n:
        decoded = decoded[:n]
        encoded = encoded[:n]
    if d_sae_pad != d_sae:
        encoded = encoded[:, :d_sae]
    decoded = decoded.reshape(*lead, d_in)
    encoded = encoded.reshape(*lead, d_sae)
    return decoded, encoded


def _reference(x, w_enc, b_enc, w_dec, b_dec):
    pre = (x - b_dec) @ w_enc + b_enc
    acts = jnp.maximum(pre, 0.0)
    return acts @ w_dec + b_dec, acts


if __name__ == "__main__":
    key = jax.random.PRNGKey(0)
    k_x, k_we, k_wd, k_be, k_bd = jax.random.split(key, 5)

    # Small shapes consistent with the module (d_in residual dim, d_sae dict).
    N, D_IN, D_SAE = 32, 64, 256
    x = jax.random.normal(k_x, (N, D_IN), dtype=jnp.float32)
    w_enc = jax.random.normal(k_we, (D_IN, D_SAE), dtype=jnp.float32) * 0.05
    w_dec = jax.random.normal(k_wd, (D_SAE, D_IN), dtype=jnp.float32) * 0.05
    b_enc = jax.random.normal(k_be, (D_SAE,), dtype=jnp.float32) * 0.1
    b_dec = jax.random.normal(k_bd, (D_IN,), dtype=jnp.float32) * 0.1

    ref_dec, ref_enc = _reference(x, w_enc, b_enc, w_dec, b_dec)

    # 1) f32 compute with small tiles: exercises the full 2-D grid
    #    (2 parallel batch tiles x 2 d_sae chunks with in-place decode
    #    accumulation), tight tolerance.
    dec_f32, enc_f32 = sae_forward(x, w_enc, b_enc, w_dec, b_dec,
                                   tm=16, tk=128, compute_dtype=jnp.float32)
    jax.block_until_ready((dec_f32, enc_f32))
    assert jnp.allclose(dec_f32, ref_dec, atol=2e-4, rtol=2e-4)
    assert jnp.allclose(enc_f32, ref_enc, atol=2e-4, rtol=2e-4)

    # 2) Default fast path (bf16 compute, f32 accumulation).
    dec_bf, enc_bf = sae_forward(x, w_enc, b_enc, w_dec, b_dec)
    jax.block_until_ready((dec_bf, enc_bf))
    assert jnp.allclose(dec_bf, ref_dec, atol=5e-2, rtol=5e-2)
    assert jnp.allclose(enc_bf, ref_enc, atol=5e-2, rtol=5e-2)

    # 3) Ragged shapes (batch and d_sae not tile multiples) + 3-D activations.
    x3 = jax.random.normal(k_x, (2, 10, D_IN), dtype=jnp.float32)
    w_enc_r, w_dec_r, b_enc_r = w_enc[:, :200], w_dec[:200, :], b_enc[:200]
    dec3, enc3 = sae_forward(x3, w_enc_r, b_enc_r, w_dec_r, b_dec)
    jax.block_until_ready((dec3, enc3))
    ref_dec3, ref_enc3 = _reference(x3.reshape(-1, D_IN), w_enc_r, b_enc_r,
                                    w_dec_r, b_dec)
    assert dec3.shape == (2, 10, D_IN) and enc3.shape == (2, 10, 200)
    assert jnp.allclose(dec3.reshape(-1, D_IN), ref_dec3, atol=5e-2, rtol=5e-2)
    assert jnp.allclose(enc3.reshape(-1, 200), ref_enc3, atol=5e-2, rtol=5e-2)

    print("KERNEL_OK")
</pallas_src>

<mosaic_0001>
module attributes {stable_mosaic.version = 11 : i64} {
  func.func @_sae_kernel(%arg0: i32, %arg1: i32, %arg2: memref<16x64xf32, #tpu.memory_space<vmem>>, %arg3: memref<64x128xf32, #tpu.memory_space<vmem>>, %arg4: memref<1x128xf32, #tpu.memory_space<vmem>>, %arg5: memref<128x64xf32, #tpu.memory_space<vmem>>, %arg6: memref<1x64xf32, #tpu.memory_space<vmem>>, %arg7: memref<16x64xf32, #tpu.memory_space<vmem>>, %arg8: memref<16x128xf32, #tpu.memory_space<vmem>>) attributes {dimension_semantics = [#tpu.dimension_semantics<parallel>, #tpu.dimension_semantics<arbitrary>], iteration_bounds = array<i64: 2, 2>, scalar_prefetch = 0 : i64, scratch_operands = 0 : i64, tpu.core_type = #tpu.core_type<tc>, window_params = [{transform_indices = @transform_0, window_bounds = array<i64: 16, 64>}, {transform_indices = @transform_1, window_bounds = array<i64: 64, 128>}, {transform_indices = @transform_2, window_bounds = array<i64: 1, 128>}, {transform_indices = @transform_3, window_bounds = array<i64: 128, 64>}, {pipeline_mode = #tpu.pipeline_mode<synchronous>, transform_indices = @transform_4, window_bounds = array<i64: 1, 64>}, {transform_indices = @transform_5, window_bounds = array<i64: 16, 64>}, {transform_indices = @transform_6, window_bounds = array<i64: 16, 128>}]} {
    %c0 = arith.constant 0 : index
    %c0_0 = arith.constant 0 : index
    %0 = vector.load %arg2[%c0, %c0_0] : memref<16x64xf32, #tpu.memory_space<vmem>>, vector<16x64xf32>
    %c0_1 = arith.constant 0 : index
    %c0_2 = arith.constant 0 : index
    %1 = vector.load %arg3[%c0_1, %c0_2] : memref<64x128xf32, #tpu.memory_space<vmem>>, vector<64x128xf32>
    %cst = arith.constant dense<0.000000e+00> : vector<16x128xf32>
    %2 = tpu.matmul %0, %1, %cst {dimension_numbers = #tpu.dot_dimension_numbers<[1], [0], [0], [1], [0, 0, 1, 1], [], []>} : vector<16x64xf32>, vector<64x128xf32>, vector<16x128xf32> -> vector<16x128xf32>
    %c0_3 = arith.constant 0 : index
    %c0_4 = arith.constant 0 : index
    %3 = vector.load %arg4[%c0_3, %c0_4] : memref<1x128xf32, #tpu.memory_space<vmem>>, vector<1x128xf32>
    %4 = vector.broadcast %3 : vector<1x128xf32> to vector<16x128xf32>
    %5 = arith.addf %2, %4 : vector<16x128xf32>
    %cst_5 = arith.constant 0.000000e+00 : f32
    %6 = vector.broadcast %cst_5 : f32 to vector<16x128xf32>
    %7 = arith.maximumf %5, %6 : vector<16x128xf32>
    %c0_6 = arith.constant 0 : index
    %c0_7 = arith.constant 0 : index
    %8 = vector.load %arg8[%c0_6, %c0_7] : memref<16x128xf32, #tpu.memory_space<vmem>>, vector<16x128xf32>
    tpu.vector_store %arg8[%c0_6, %c0_7], %7 {strides = array<i32>} : memref<16x128xf32, #tpu.memory_space<vmem>>, vector<16x128xf32>,
    %c0_i32 = arith.constant 0 : i32
    %9 = arith.cmpi eq, %arg1, %c0_i32 : i32
    %10 = arith.extui %9 : i1 to i32
    %c0_i32_8 = arith.constant 0 : i32
    %11 = arith.cmpi ne, %10, %c0_i32_8 : i32
    scf.if %11 {
      %c0_16 = arith.constant 0 : index
      %c0_17 = arith.constant 0 : index
      %17 = vector.load %arg6[%c0_16, %c0_17] : memref<1x64xf32, #tpu.memory_space<vmem>>, vector<1x64xf32>
      %18 = vector.shape_cast %17 : vector<1x64xf32> to vector<1x64xf32>
      %19 = vector.broadcast %18 : vector<1x64xf32> to vector<16x64xf32>
      %c0_18 = arith.constant 0 : index
      %c0_19 = arith.constant 0 : index
      %20 = vector.load %arg7[%c0_18, %c0_19] : memref<16x64xf32, #tpu.memory_space<vmem>>, vector<16x64xf32>
      tpu.vector_store %arg7[%c0_18, %c0_19], %19 {strides = array<i32>} : memref<16x64xf32, #tpu.memory_space<vmem>>, vector<16x64xf32>,
    } else {
    }
    %c0_9 = arith.constant 0 : index
    %c0_10 = arith.constant 0 : index
    %12 = vector.load %arg7[%c0_9, %c0_10] : memref<16x64xf32, #tpu.memory_space<vmem>>, vector<16x64xf32>
    %c0_11 = arith.constant 0 : index
    %c0_12 = arith.constant 0 : index
    %13 = vector.load %arg5[%c0_11, %c0_12] : memref<128x64xf32, #tpu.memory_space<vmem>>, vector<128x64xf32>
    %cst_13 = arith.constant dense<0.000000e+00> : vector<16x64xf32>
    %14 = tpu.matmul %7, %13, %cst_13 {dimension_numbers = #tpu.dot_dimension_numbers<[1], [0], [0], [1], [0, 0, 1, 1], [], []>} : vector<16x128xf32>, vector<128x64xf32>, vector<16x64xf32> -> vector<16x64xf32>
    %15 = arith.addf %12, %14 : vector<16x64xf32>
    %c0_14 = arith.constant 0 : index
    %c0_15 = arith.constant 0 : index
    %16 = vector.load %arg7[%c0_14, %c0_15] : memref<16x64xf32, #tpu.memory_space<vmem>>, vector<16x64xf32>
    tpu.vector_store %arg7[%c0_14, %c0_15], %15 {strides = array<i32>} : memref<16x64xf32, #tpu.memory_space<vmem>>, vector<16x64xf32>,
    return
  }
  func.func @transform_0(%arg0: i32, %arg1: i32) -> (i32, i32) {
    %c0_i32 = arith.constant 0 : i32
    %c0_i32_0 = arith.constant 0 : i32
    return %arg0, %c0_i32 : i32, i32
  }
  func.func @transform_1(%arg0: i32, %arg1: i32) -> (i32, i32) {
    %c0_i32 = arith.constant 0 : i32
    %c0_i32_0 = arith.constant 0 : i32
    return %c0_i32, %arg1 : i32, i32
  }
  func.func @transform_2(%arg0: i32, %arg1: i32) -> (i32, i32) {
    %c0_i32 = arith.constant 0 : i32
    %c0_i32_0 = arith.constant 0 : i32
    return %c0_i32, %arg1 : i32, i32
  }
  func.func @transform_3(%arg0: i32, %arg1: i32) -> (i32, i32) {
    %c0_i32 = arith.constant 0 : i32
    %c0_i32_0 = arith.constant 0 : i32
    return %arg1, %c0_i32 : i32, i32
  }
  func.func @transform_4(%arg0: i32, %arg1: i32) -> (i32, i32) {
    %c0_i32 = arith.constant 0 : i32
    %c0_i32_0 = arith.constant 0 : i32
    %c0_i32_1 = arith.constant 0 : i32
    return %c0_i32, %c0_i32_0 : i32, i32
  }
  func.func @transform_5(%arg0: i32, %arg1: i32) -> (i32, i32) {
    %c0_i32 = arith.constant 0 : i32
    %c0_i32_0 = arith.constant 0 : i32
    return %arg0, %c0_i32 : i32, i32
  }
  func.func @transform_6(%arg0: i32, %arg1: i32) -> (i32, i32) {
    %c0_i32 = arith.constant 0 : i32
    return %arg0, %arg1 : i32, i32
  }
}

</mosaic_0001>

<bundles_post_ra>
// kernel: tpu_custom_call.1
= control target key start
LH: loop header
LB: loop body
LE: loop exit
PB: predicated region body
PF: predicated region fallthrough
CT: control target
= control target key end

     0   :  { %s1610_s0 = inlined_call_operand.vmem [shape: f32[32,64], index: 0, kind: input, shape index: {}]   ;;  %s1611_s1 = inlined_call_operand.vmem [shape: f32[64,256], index: 1, kind: input, shape index: {}]   ;;  %s1612_s2 = inlined_call_operand.vmem [shape: f32[1,256], index: 2, kind: input, shape index: {}]   ;;  %s1613_s3 = inlined_call_operand.vmem [shape: f32[256,64], index: 3, kind: input, shape index: {}]   ;;  %s1614_s4 = inlined_call_operand.vmem [shape: f32[1,64], index: 4, kind: input, shape index: {}]   ;;  %s1615_s5 = inlined_call_operand.hbm [shape: f32[32,64], index: 5, kind: output, shape index: {0}]   ;;  %s1616_s6 = inlined_call_operand.hbm [shape: f32[32,256], index: 6, kind: output, shape index: {1}]  }
   0x1   :  { %1624 = sst [smem:[#allocation16_spill]] %s1611_s1 }
   0x2   :  { %1625 = sst [smem:[#allocation17_spill]] %s1615_s5 }
   0x3   :  { %12 = vsyncpa [#allocation4], 0 }
   0x4   :  { %14 = vsyncpa [#allocation4 + $0x1], 0 }
   0x5   :  { %15 = vsyncpa [#allocation6], 0 }
   0x6   :  { %17 = vsyncpa [#allocation6 + $0x1], 0  ;;  %s1280_s21 = smov 0   ;;  %s1282_s22 = smov 0  }
   0x7   :  { %s1284_s23 = smov 0   ;;  %s1286_s24 = smov 0  }
   0x8   :  { %s1288_s25 = smov 0   ;;  %s1290_s26 = smov 0  }
   0x9   :  { %s1292_s27 = smov 0   ;;  %s1294_s28 = smov 0  }
   0xa   :  { %s1296_s29 = smov 0   ;;  %s1298_s30 = smov 0  }
   0xb   :  { %s1300_s7 = smov 0   ;;  %s1302_s8 = smov 0  }
   0xc   :  { %s1304_s9 = smov 0  }
   0xd LB: > { %1626 = sst [smem:[#allocation9_spill]] %s1218_s28  ;;  %s793_s10 = sadd.s32 4294967295, %s1238_s9   ;;  %s1238_s9 = sphi %s1304_s9, %s23_s9   ;;  %s1234_s8 = sphi %s1302_s8, %s1656_s8   ;;  %s1230_s7 = sphi %s1300_s7, %s1648_s7   ;;  %s1226_s30 = sphi %s1298_s30, %s1647_s30   ;;  %s1222_s29 = sphi %s1296_s29, %s1646_s29   ;;  %s1218_s28 = sphi %s1294_s28, %s1645_s28   ;;  %s1214_s27 = sphi %s1292_s27, %s1644_s27   ;;  %s1210_s26 = sphi %s1290_s26, %s1655_s26   ;;  %s1206_s25 = sphi %s1288_s25, %s1654_s25   ;;  %s1202_s24 = sphi %s1286_s24, %s1653_s24   ;;  %s1198_s23 = sphi %s1284_s23, %s1652_s23   ;;  %s1194_s22 = sphi %s1282_s22, %s1651_s22   ;;  %s1190_s21 = sphi %s1280_s21, %s1650_s21  }
   0xe   : > { %1627 = sst [smem:[#allocation10_spill]] %s1230_s7  ;;  %s794_s11 = sadd.s32 4294967294, %s1238_s9  }
   0xf   : > { %1628 = sst [smem:[#allocation11_spill]] %s1234_s8  ;;  %s32_s12 = sadd.s32 1, %s1230_s7 }
  0x10   : > { %s35_s13 = sadd.s32 1, %s1234_s8  ;;  %p33_p0 = scmp.ge.s32.totalorder %s32_s12, 2 }
  0x11   : > { %s68_s14 = sadd.s32 1, %s1218_s28  ;;  %p75_p1 = scmp.ne.s32.totalorder %s1218_s28, %s1214_s27 }
  0x12   : > { %p76_p2 = scmp.eq.s32.totalorder %s1238_s9, 0  ;;  %s1658_s12 = smov (%p33_p0, %s32_s12), 0 }
  0x13   : > { %1629 = sst [smem:[#allocation12_spill]] %s1658_s12  ;;  %s1660_s13 = smov (!%p33_p0, %s35_s13), %s1234_s8 }
  0x14   : > { %s65_s15 = ssub.s32 %s1230_s7, %s1658_s12  ;;  %p1358_p3 = por %p76_p2, %p75_p1 }
  0x15   : > { %p37_p4 = scmp.ge.s32.totalorder %s1660_s13, 2  ;;  %p66_p5 = scmp.eq.s32.totalorder %s65_s15, 0 }
  0x16   : > { %s167_s17 = sadd.s32 1, %s1210_s26  ;;  %p177_p6 = scmp.ne.s32.totalorder %s1210_s26, %s1206_s25 }
  0x17   : > { %s1662_s13 = smov (%p37_p4, %s1660_s13), 0  ;;  %p1372_p7 = scmp.eq.s32.totalorder %s793_s10, 3 }
  0x18   : > { %1631 = sst [smem:[#allocation13_spill]] %s1662_s13  ;;  %s164_s19 = ssub.s32 %s1234_s8, %s1662_s13 }
  0x19   : > { %s1368_s18 = scalar_select %p66_p5, %s1218_s28, %s68_s14  }
  0x1a   : > { %p165_p8 = scmp.eq.s32.totalorder %s164_s19, 0  ;;  %p183_p9 = scmp.ne.s32.totalorder %s1206_s25, %s1202_s24 }
  0x1b   : > { %1632 = sst [smem:[#allocation14_spill]] %s1368_s18  ;;  %p1380_p10 = por %p1372_p7, %p177_p6 }
  0x1c   : > { %p184_p11 = scmp.eq.s32.totalorder %s794_s11, 3  ;;  %s192_s10 = sor.u32 %s164_s19, %s65_s15 }
  0x1d   : > { %s1385_s5 = scalar_select %p165_p8, %s1210_s26, %s167_s17  }
  0x1e   : > { %p1387_p12 = por %p184_p11, %p183_p9  ;;  %p193_p13 = scmp.eq.s32.totalorder %s192_s10, 0 }
  0x1f   : > { %1635 = sst [smem:[#allocation15_spill]] %s1385_s5  ;;  %s195_s13 = sadd.s32 1, %s1198_s23 }
  0x20   : > { %p205_p0 = scmp.ne.s32.totalorder %s1198_s23, %s1194_s22  ;;  %p211_p1 = scmp.ne.s32.totalorder %s1194_s22, %s1190_s21 }
  0x21   : > { %s1397_s8 = scalar_select %p193_p13, %s1198_s23, %s195_s13  }
  0x22   : > { %p1401_p2 = por %p205_p0, %p1372_p7  ;;  %p1405_p4 = por %p211_p1, %p184_p11 }
  0x23   : > { %p796_p5 = scmp.ge.s32.totalorder %s1238_s9, 4 }
  0x25   : > { %231 = sbr.rel (%p796_p5) target bundleno = 58 (0x3a), region = 20 }
  0x2c   : > { %243 = sbr.rel (!%p1358_p3) target bundleno = 58 (0x3a), region = 28  ;;  %s245_s15 = sand.u32 (%p1358_p3), 1, %s1218_s28  }
  0x2d   : > { %s798_s13 = sshll.u32 (%p1358_p3), %s1230_s7, 3  ;;  %s797_s17 = sshll.u32 (%p1358_p3), %s245_s15, 6 }
  0x2e   : > { %s1639_s1 = sld [smem:[#allocation16_spill]] (%p1358_p3)  ;;  %s247_s5 = scalar_lea.vmem (%p1358_p3), [#allocation2], %s797_s17 }
  0x34   : > { %s249_s10 = scalar_lea.vmem %s1639_s1, %s798_s13 }
  0x35   : > { %v291_v0 = vld [vmem:[%s249_s10] sm:$0xff]  ;;  %v293_v1 = vld [vmem:[%s249_s10 + $0x10] sm:$0xff] }
  0x36   : > { %v295_v2 = vld [vmem:[%s249_s10 + $0x20] sm:$0xff]  ;;  %292 = vst [vmem:[%s247_s5] sm:$0xff] %v291_v0  ;;  %294 = vst [vmem:[%s247_s5 + $0x8] sm:$0xff] %v293_v1  ;;  %v297_v3 = vld [vmem:[%s249_s10 + $0x30] sm:$0xff] }
  0x37   : > { %296 = vst [vmem:[%s247_s5 + $0x10] sm:$0xff] %v295_v2  ;;  %v299_v4 = vld [vmem:[%s249_s10 + $0x40] sm:$0xff]  ;;  %v301_v5 = vld [vmem:[%s249_s10 + $0x50] sm:$0xff]  ;;  %298 = vst [vmem:[%s247_s5 + $0x18] sm:$0xff] %v297_v3 }
  0x38   : > { %300 = vst [vmem:[%s247_s5 + $0x20] sm:$0xff] %v299_v4  ;;  %302 = vst [vmem:[%s247_s5 + $0x28] sm:$0xff] %v301_v5  ;;  %v303_v6 = vld [vmem:[%s249_s10 + $0x60] sm:$0xff]  ;;  %v305_v7 = vld [vmem:[%s249_s10 + $0x70] sm:$0xff] }
  0x39   : > { %304 = vst [vmem:[%s247_s5 + $0x30] sm:$0xff] %v303_v6  ;;  %306 = vst [vmem:[%s247_s5 + $0x38] sm:$0xff] %v305_v7 }
  0x3a PF: > { %p799_p3 = scmp.ge.s32.totalorder %s1238_s9, 1  ;;  %p326_p6 = scmp.lt.s32.totalorder %s1238_s9, 5 }
  0x3c   : > { %p327_p7 = pnand %p799_p3, %p326_p6 }
  0x3d   : > { %s333_s16 = sand.u32 (!%p327_p7), 1, %s1214_s27   ;;  %s1621_s15 = sand.u32 (!%p327_p7), 1, %s1206_s25   ;;  %vm414_vm0 = vcmask (!%p327_p7), 523264  }
  0x3e   : > { %330 = sbr.rel (%p327_p7) target bundleno = 566 (0x236), region = 74  ;;  %s800_s13 = sshll.u32 (!%p327_p7), %s333_s16, 6 }
  0x3f   : > { %s1423_s17 = sshll.u32 (!%p327_p7), %s1621_s15, 4  ;;  %s805_s5 = sshll.u32 (!%p327_p7), %s1222_s29, 4 }
  0x40   : > { %s335_s19 = scalar_lea.vmem (!%p327_p7), [#allocation2], %s800_s13  ;;  %s803_s20 = sshll.u32 (!%p327_p7), %s1226_s30, 1 }
  0x41   : > { %v399_v8 = vld [vmem:[%s335_s19] sm:$0xff] (!%p327_p7)  ;;  %v400_v9 = vld [vmem:[%s335_s19 + $0x8] sm:$0xff] (!%p327_p7)  ;;  %v401_v10 = vld [vmem:[%s335_s19 + $0x10] sm:$0xff] (!%p327_p7)  ;;  %p390_p8 = scmp.lt.s32.totalorder (!%p327_p7), %s805_s5, 31  ;;  %p381_p9 = scmp.lt.s32.totalorder (!%p327_p7), %s803_s20, 3 }
  0x42   : > { %v905_v11 = vpack.c.bf16 (!%p327_p7), %v400_v9, %v399_v8  ;;  %v402_v12 = vld [vmem:[%s335_s19 + $0x18] sm:$0xff] (!%p327_p7)  ;;  %v403_v14 = vld [vmem:[%s335_s19 + $0x20] sm:$0xff] (!%p327_p7)  ;;  %v404_v15 = vld [vmem:[%s335_s19 + $0x28] sm:$0xff] (!%p327_p7)  ;;  %p386_p11 = scmp.lt.s32.totalorder (!%p327_p7), %s1222_s29, 1  ;;  %s377_s7 = sand.u32 (!%p327_p7), 1, %s1194_s22  }
  0x43   : > { %v909_v13 = vpack.c.bf16 (!%p327_p7), %v402_v12, %v401_v10  ;;  %v913_v16 = vpack.c.bf16 (!%p327_p7), %v404_v15, %v403_v14  ;;  %v405_v17 = vld [vmem:[%s335_s19 + $0x30] sm:$0xff] (!%p327_p7)  ;;  %v406_v18 = vld [vmem:[%s335_s19 + $0x38] sm:$0xff] (!%p327_p7)  ;;  %p810_p13 = scmp.ne.s32.totalorder (!%p327_p7), %s1222_s29, 0 }
  0x44   : > { %906 = vmatprep.subr.bf16.mxu0 (!%p327_p7), %v905_v11  ;;  %v917_v20 = vpack.c.bf16 (!%p327_p7), %v406_v18, %v405_v17 }
  0x45   : > { %s1664_s5 = smov (!%p390_p8, %s805_s5), 31  ;;  %908 = vmatpush3.bf16.msra.mxu0 %v905_v11  ;;  %s1666_s20 = smov (!%p381_p9, %s803_s20), 3 }
  0x46   : > { %s806_s27 = sshll.u32 %s1664_s5, 3  ;;  %910 = vmatprep.subr.bf16.mxu0 %v909_v13  ;;  %s804_s15 = sshll.u32 %s1666_s20, 3  ;;  %v811_v29 = vld [vmem:[%s1614_s4] ss:$0 sm:$0xff] (!%p810_p13) }
  0x47   : > { %s1430_s13 = scalar_lea.vmem %s1613_s3, %s806_s27  ;;  %s384_s28 = scalar_lea.vmem %s1610_s0, %s804_s15 }
  0x48   : > { %v397_v19 = vld [vmem:[%s384_s28] sm:$0xff]  ;;  %v398_v21 = vld [vmem:[%s384_s28 + $0x8] sm:$0xff]  ;;  %s387_s5 = scalar_select %p386_p11, %s1222_s29, 1 }
  0x49   : > { %912 = vmatpush3.bf16.msra.mxu0 %v909_v13  ;;  %867 = vmatprep.mubr.msk.f32.mxu0 %vm414_vm0, %v397_v19  ;;  %s802_s15 = sshll.u32 %s377_s7, 4  ;;  %s1450_s27 = scalar_lea.vmem [#allocation3], %s1423_s17 }
  0x4a   : > { %914 = vmatprep.subr.bf16.mxu0 %v913_v16  ;;  %s388_s1 = scalar_lea.vmem %s1612_s2, %s387_s5  ;;  %s1445_s28 = scalar_lea.vmem [#allocation5], %s802_s15  ;;  %511 = vst.msk [vmem:[%s1450_s27] sm:$0xff] (!%p810_p13), %vm414_vm0, %v811_v29  ;;  %512 = vst.msk [vmem:[%s1450_s27 + $0x8] sm:$0xff] (!%p810_p13), %vm414_vm0, %v811_v29 }
  0x4b   : > { %v807_v22 = vld [vmem:[%s388_s1] ss:$0 sm:$0xff] }
  0x4d   : > { %916 = vmatpush3.bf16.msra.mxu0 %v913_v16 }
  0x4e   : > { %918 = vmatprep.subr.bf16.mxu0 %v917_v20 }
  0x51   : > { %920 = vmatpush3.bf16.msra.mxu0 %v917_v20 }
  0x54   : > { %868 = vmatmul.mubr.msk.f32.vlgmr.msra.gmra.mrb[0].mxu0 %vm414_vm0, %v398_v21 }
 0x127   : > { %v869_v23 = vpop.f32.mrb[0].mxu0  ;;  %503 = sbr.rel (%p810_p13) target bundleno = 302 (0x12e), region = 82 }
 0x128   : > { %v493_v24 = vadd.f32 %v869_v23, %v807_v22  ;;  %v487_v25 = vpop.f32.mrb[1].mxu0 }
 0x129   : > { %v488_v26 = vadd.f32 %v807_v22, %v487_v25 }
 0x12a   : > { %v497_v27 = vmax.f32 %v493_v24, 0.0 }
 0x12b   : > { %v496_v28 = vmax.f32 %v488_v26, 0.0 }
 0x12c   : > { %499 = vst [vmem:[%s1445_s28 + $0x8] sm:$0xff] %v497_v27 }
 0x12d   : > { %498 = vst [vmem:[%s1445_s28] sm:$0xff] %v496_v28 }
 0x12e PF: > { %v515_v30 = vld [vmem:[%s1430_s13] sm:$0xff]  ;;  %v516_v31 = vld [vmem:[%s1430_s13 + $0x8] sm:$0xff]  ;;  %v517_v32 = vld [vmem:[%s1430_s13 + $0x10] sm:$0xff]  ;;  %902 = vmatprep.mubr.f32.mxu1 %v496_v28  ;;  %s822_s17 = sshll.u32 %s1226_s30, 2  ;;  %s647_s20 = sshll.u32 %s1445_s28, 4  ;;  %s1484_s20 = int_to_ptr.vmem [resolvable:$true] %s647_s20 }
 0x12f   : > { %v921_v33 = vpack.c.bf16 %v516_v31, %v515_v30  ;;  %v518_v34 = vld [vmem:[%s1430_s13 + $0x18] sm:$0xff]  ;;  %v519_v36 = vld [vmem:[%s1430_s13 + $0x20] sm:$0xff]  ;;  %v520_v37 = vld [vmem:[%s1430_s13 + $0x28] sm:$0xff]  ;;  %s644_s5 = sadd.s32 %s1222_s29, %s822_s17  ;;  %s1072_s16 = scalar_lea.vmem %s1484_s20, 256 }
 0x130   : > { %v925_v35 = vpack.c.bf16 %v518_v34, %v517_v32  ;;  %v929_v38 = vpack.c.bf16 %v520_v37, %v519_v36  ;;  %v521_v39 = vld [vmem:[%s1430_s13 + $0x30] sm:$0xff]  ;;  %v522_v40 = vld [vmem:[%s1430_s13 + $0x38] sm:$0xff]  ;;  %v523_v42 = vld [vmem:[%s1430_s13 + $0x40] sm:$0xff]  ;;  %s818_s19 = sshll.u32 %s644_s5, 7  ;;  %p1073_p0 = scmp.ne.s32.totalorder %s1484_s20, %s1072_s16 }
 0x131   : > { %922 = vmatprep.subr.bf16.mxu1 %v921_v33  ;;  %v933_v41 = vpack.c.bf16 %v522_v40, %v521_v39  ;;  %v524_v43 = vld [vmem:[%s1430_s13 + $0x48] sm:$0xff]  ;;  %v525_v45 = vld [vmem:[%s1430_s13 + $0x50] sm:$0xff]  ;;  %v526_v46 = vld [vmem:[%s1430_s13 + $0x58] sm:$0xff]  ;;  %s1482_s10 = scalar_lea.hbm %s1616_s6, %s818_s19  ;;  %s1240_s29 = smov [#allocation5]  }
 0x132   : > { %924 = vmatpush3.bf16.msra.mxu1 %v921_v33  ;;  %v937_v44 = vpack.c.bf16 %v524_v43, %v523_v42  ;;  %v941_v47 = vpack.c.bf16 %v526_v46, %v525_v45  ;;  %v527_v48 = vld [vmem:[%s1430_s13 + $0x60] sm:$0xff]  ;;  %v528_v49 = vld [vmem:[%s1430_s13 + $0x68] sm:$0xff]  ;;  %v529_v51 = vld [vmem:[%s1430_s13 + $0x70] sm:$0xff]  ;;  %p1074_p1 = pnand %p1073_p0, %p1401_p2  ;;  %s1076_s28 = sshll.u32 %s1240_s29, 4  ;;  %s1077_s28 = int_to_ptr.vmem [resolvable:$false] %s1076_s28 }
 0x133   : > { %926 = vmatprep.subr.bf16.mxu1 %v925_v35  ;;  %v945_v50 = vpack.c.bf16 %v528_v49, %v527_v48  ;;  %v530_v52 = vld [vmem:[%s1430_s13 + $0x78] sm:$0xff]  ;;  %s1488_s13 = scalar_lea.sflag [#allocation6], %s377_s7  ;;  %s1078_s17 = scalar_lea.vmem %s1077_s28, 512 }
 0x134   : > { %v949_v53 = vpack.c.bf16 %v530_v52, %v529_v51  ;;  %p1075_p5 = pneg %p1074_p1  ;;  %p1079_p3 = scmp.lt.s32.totalorder %s1484_s20, %s1077_s28 }
 0x135   : > { %p1080_p6 = scmp.lt.s32.totalorder %s1078_s17, %s1072_s16 }
 0x136   : > { %928 = vmatpush3.bf16.msra.mxu1 %v925_v35 }
 0x137   : > { %930 = vmatprep.subr.bf16.mxu1 %v929_v38  ;;  %p1081_p7 = por %p1080_p6, %p1079_p3 }
 0x139   : > { %p1082_p8 = pnand %p1081_p7, %p1075_p5 }
 0x13a   : > { %932 = vmatpush3.bf16.msra.mxu1 %v929_v38 }
 0x13b   : > { %934 = vmatprep.subr.bf16.mxu1 %v933_v41 }
 0x13e   : > { %936 = vmatpush3.bf16.msra.mxu1 %v933_v41 }
 0x13f   : > { %938 = vmatprep.subr.bf16.mxu1 %v937_v44 }
 0x142   : > { %940 = vmatpush3.bf16.msra.mxu1 %v937_v44 }
 0x143   : > { %942 = vmatprep.subr.bf16.mxu1 %v941_v47 }
 0x146   : > { %944 = vmatpush3.bf16.msra.mxu1 %v941_v47 }
 0x147   : > { %946 = vmatprep.subr.bf16.mxu1 %v945_v50 }
 0x14a   : > { %948 = vmatpush3.bf16.msra.mxu1 %v945_v50 }
 0x14b   : > { %950 = vmatprep.subr.bf16.mxu1 %v949_v53 }
 0x14e   : > { %952 = vmatpush3.bf16.msra.mxu1 %v949_v53 }
 0x151   : > { %903 = vmatmul.mubr.f32.vlgmr.msra.gmra.mrb[0].mxu1 %v497_v27 }
 0x152   : > { %1085 = shalt.err (!%p1082_p8)
}
 0x153   : > { %s1086_s7 = scalar_lea.hbm %s1482_s10, 256  ;;  %s1090_s1 = scalar_lea.hbm %s1616_s6, 1024 }
 0x154   : > { %p1087_p9 = scmp.ne.s32.totalorder %s1482_s10, %s1086_s7  ;;  %p1091_p0 = scmp.lt.u32.totalorder %s1482_s10, %s1616_s6 }
 0x155   : > { %p1092_p1 = scmp.lt.u32.totalorder %s1090_s1, %s1086_s7  ;;  %p1094_p3 = scmp.lt.u32.totalorder %s1086_s7, %s1482_s10 }
 0x156   : > { %p1088_p11 = pnand %p1087_p9, %p1401_p2 }
 0x157   : > { %p1093_p5 = por %p1092_p1, %p1091_p0 }
 0x158   : > { %p1089_p13 = pneg %p1088_p11 }
 0x159   : > { %p1095_p6 = por %p1094_p3, %p1093_p5 }
 0x15b   : > { %p1096_p7 = pnand %p1095_p6, %p1089_p13 }
 0x15d   : > { %1099 = shalt.err (!%p1096_p7)
}
 0x15e   : > { %s1241_s16 = smov 128   ;;  %s1242_s28 = smov 256   ;;  %v514_v54 = vld [vmem:[%s1450_s27 + $0x8] sm:$0xff]  ;;  %v513_v55 = vld [vmem:[%s1450_s27] sm:$0xff] }
 0x15f   : > { %s1243_s17 = smov 8   ;;  %s821_s7 = sshll.u32 %s1226_s30, 8 }
 0x160   : > { %954 = dma.vmem_to_hbm [thread:$0]  (%p1401_p2), %s1484_s20, 256, %s1482_s10, %s1488_s13, %s1241_s16, %s1242_s28, %s1243_s17  }
 0x161   : > { %s629_s5 = sshll.u32 %s1450_s27, 4  ;;  %s1640_s15 = sld [smem:[#allocation17_spill]]  ;;  %s1523_s5 = int_to_ptr.vmem [resolvable:$true] %s629_s5 }
 0x162   : > { %s1641_s30 = sand.u32 1, %s1206_s25   ;;  %s1100_s20 = scalar_lea.vmem %s1523_s5, 256 }
 0x163   : > { %s1531_s18 = scalar_lea.sflag [#allocation4], %s1641_s30  ;;  %p1101_p2 = scmp.ne.s32.totalorder %s1523_s5, %s1100_s20 }
 0x164   : > { %s1244_s10 = smov [#allocation3]  }
 0x165   : > { %p1102_p8 = pnand %p1101_p2, %p1380_p10  ;;  %s1104_s13 = sshll.u32 %s1244_s10, 4  ;;  %s1105_s13 = int_to_ptr.vmem [resolvable:$false] %s1104_s13 }
 0x166   : > { %s1106_s28 = scalar_lea.vmem %s1105_s13, 512  ;;  %p1107_p11 = scmp.lt.s32.totalorder %s1523_s5, %s1105_s13 }
 0x167   : > { %s1521_s29 = scalar_lea.hbm %s1640_s15, %s821_s7  ;;  %p1103_p9 = pneg %p1102_p8 }
 0x168   : > { %p1108_p13 = scmp.lt.s32.totalorder %s1106_s28, %s1100_s20 }
 0x16a   : > { %p1109_p0 = por %p1108_p13, %p1107_p11 }
 0x16c   : > { %p1110_p1 = pnand %p1109_p0, %p1103_p9 }
 0x224   : > { %v904_v56 = vpop.f32.mrb[0].mxu1 }
 0x225   : > { %v607_v57 = vadd.f32 %v904_v56, %v514_v54  ;;  %v597_v58 = vpop.f32.mrb[1].mxu1 }
 0x226   : > { %v606_v59 = vadd.f32 %v597_v58, %v513_v55 }
 0x227   : > { %609 = vst.msk [vmem:[%s1450_s27 + $0x8] sm:$0xff] %vm414_vm0, %v607_v57 }
 0x228   : > { %608 = vst.msk [vmem:[%s1450_s27] sm:$0xff] %vm414_vm0, %v606_v59 }
 0x229   : > { %1113 = shalt.err (!%p1110_p1)
}
 0x22a   : > { %s1114_s27 = scalar_lea.hbm %s1521_s29, 256  ;;  %s1118_s1 = scalar_lea.hbm %s1640_s15, 512 }
 0x22b   : > { %p1115_p5 = scmp.ne.s32.totalorder %s1521_s29, %s1114_s27  ;;  %p1119_p7 = scmp.lt.u32.totalorder %s1521_s29, %s1640_s15 }
 0x22c   : > { %p1120_p2 = scmp.lt.u32.totalorder %s1118_s1, %s1114_s27  ;;  %p1122_p9 = scmp.lt.u32.totalorder %s1114_s27, %s1521_s29 }
 0x22d   : > { %p1116_p3 = pnand %p1115_p5, %p1380_p10 }
 0x22e   : > { %p1121_p8 = por %p1120_p2, %p1119_p7 }
 0x22f   : > { %p1117_p6 = pneg %p1116_p3 }
 0x230   : > { %p1123_p11 = por %p1122_p9, %p1121_p8 }
 0x232   : > { %p1124_p13 = pnand %p1123_p11, %p1117_p6 }
 0x234   : > { %1127 = shalt.err (!%p1124_p13)
}
 0x235   : > { %953 = dma.vmem_to_hbm [thread:$0]  (%p1380_p10), %s1523_s5, 256, %s1521_s29, %s1531_s18, %s1241_s16, %s1241_s16, %s1243_s17  }
 0x236 PF: > { %p964_p0 = scmp.ge.s32.totalorder %s1238_s9, 2  ;;  %s662_s20 = sand.u32 1, %s1202_s24  }
 0x237   : > { %s663_s13 = scalar_lea.sflag [#allocation4], %s662_s20 }
 0x238   : > { %p958_p1 = pnand %p964_p0, %p1387_p12 }
 0x23a   : > { %1181 = dma.done.wait (!%p958_p1), %s663_s13, 256  }
 0x23b   : > { %1183 = vsyncadd (!%p958_p1), %s663_s13, 4294967040  ;;  %s671_s12 = sand.u32 1, %s1190_s21   ;;  %p961_p5 = pnand %p964_p0, %p1405_p4 }
 0x23c   : > { %s672_s28 = scalar_lea.sflag [#allocation6], %s671_s12 }
 0x23d   : > { %1185 = dma.done.wait (!%p961_p5), %s672_s28, 256  }
 0x23e   : > { %1187 = vsyncadd (!%p961_p5), %s672_s28, 4294967040  ;;  %s23_s9 = sadd.s32 1, %s1238_s9   ;;  %s1643_s14 = sld [smem:[#allocation15_spill]] }
 0x23f   : > { %p1566_p10 = scmp.ge.s32.totalorder %s23_s9, 6   ;;  %s1644_s27 = sld [smem:[#allocation9_spill]] }
 0x240   : > { %s1645_s28 = sld [smem:[#allocation14_spill]]  ;;  %s1646_s29 = sld [smem:[#allocation10_spill]] }
 0x241   : > { %s1647_s30 = sld [smem:[#allocation11_spill]]  ;;  %s1648_s7 = sld [smem:[#allocation12_spill]] }
 0x242   : > { %s1649_s11 = sld [smem:[#allocation13_spill]]  ;;  %s1650_s21 = smov %s1194_s22 }
 0x243   : > { %s1651_s22 = smov %s1198_s23  ;;  %s1652_s23 = smov %s1397_s8 }
 0x244   : > { %s1653_s24 = smov %s1206_s25  ;;  %s1654_s25 = smov %s1210_s26 }
 0x245   : > { %s1655_s26 = smov %s1643_s14  ;;  %22 = sbr.rel (!%p1566_p10) target bundleno = 13 (0xd), region = 148 }
 0x248   : > { %s1656_s8 = smov %s1649_s11 }
 0x24c   :  { %677 = vsyncpa [#allocation4], 1 }
 0x24d   :  { %679 = vsyncpa [#allocation4 + $0x1], 1 }
 0x24e   :  { %680 = vsyncpa [#allocation6], 1 }
 0x24f   :  { %682 = vsyncpa [#allocation6 + $0x1], 1 }

</bundles_post_ra>
